<compile_context>
chip_gen: v6e
topology: v6e:2x2x1
jax: 0.10.0
libtpu: 0.0.40
codegen_flags: <defaults>
</compile_context>

<pallas_src>
import functools

import jax
import jax.numpy as jnp
from jax.experimental import pallas as pl
from jax.experimental.pallas import tpu as pltpu

_LANE = 128     # vreg lane width  (last dim)
_SUBLANE = 8    # vreg sublane width for f32 (second-to-last dim)


def _round_up(x, m):
    return (x + m - 1) // m * m


def _value_critic_kernel(x_ref, w1_ref, b1_ref, w2_ref, b2_ref, w3_ref, b3_ref, o_ref):
    """One batch tile: o = (relu(relu(x@W1+b1)@W2+b2))@W3 + b3 (all lane-padded)."""
    # (tb, n_in) — middle dim of the state squeezed away by the BlockSpec.
    # The .float() of the PyTorch module happens here via astype.
    x = x_ref[...]

    # Layer 1: MXU matmul (f32 accumulate), bias-add + ReLU on the VPU in f32.
    h1 = jnp.dot(x.astype(w1_ref.dtype), w1_ref[...],
                 preferred_element_type=jnp.float32)
    h1 = jnp.maximum(h1 + b1_ref[...], 0.0)

    # Layer 2.
    h2 = jnp.dot(h1.astype(w2_ref.dtype), w2_ref[...],
                 preferred_element_type=jnp.float32)
    h2 = jnp.maximum(h2 + b2_ref[...], 0.0)

    # Layer 3 (linear). Output block is lane-dense (n_out padded to 128),
    # so this is an unmasked full-vreg store.
    o = jnp.dot(h2.astype(w3_ref.dtype), w3_ref[...],
                preferred_element_type=jnp.float32)
    o_ref[...] = o + b3_ref[...]


def prepare_params(params, compute_dtype=jnp.float32):
    """One-time parameter layout for the kernel.

    - weights stored as (in, out) (transpose of torch.nn.Linear),
    - n_features / n_output zero-padded up to the 128-lane tile,
    - biases stored as (1, out_padded) rows (zero-padded -> padding lanes inert),
    - weights cast to `compute_dtype` (f32 default; bf16 for MXU throughput),
      biases kept in f32 (VPU math stays f32).
    n_input is left unpadded: the state cannot be padded without a per-call op
    and the contraction dim is tiny anyway.
    Returns (padded_params, n_output).
    """
    w1, w2, w3 = params["w1"], params["w2"], params["w3"]
    b1, b2, b3 = params["b1"], params["b2"], params["b3"]
    n_in, nf = w1.shape
    n_out = w3.shape[1]
    nf_p = _round_up(nf, _LANE)
    no_p = _round_up(n_out, _LANE)

    def pad_w(w, rows, cols):
        w = w.astype(jnp.float32)
        w = jnp.pad(w, ((0, rows - w.shape[0]), (0, cols - w.shape[1])))
        return w.astype(compute_dtype)

    def pad_b(b, cols):
        b = b.astype(jnp.float32)
        return jnp.pad(b, (0, cols - b.shape[0])).reshape(1, cols)

    padded = {
        "w1": pad_w(w1, n_in, nf_p),
        "b1": pad_b(b1, nf_p),
        "w2": pad_w(w2, nf_p, nf_p),
        "b2": pad_b(b2, nf_p),
        "w3": pad_w(w3, nf_p, no_p),
        "b3": pad_b(b3, no_p),
    }
    return padded, n_out


@functools.partial(jax.jit, static_argnames=("n_out", "block_b"))
def value_critic_forward(state, params, *, n_out=1, block_b=512):
    """Forward pass matching ValueCriticNetwork.forward.

    state:  (B, 1, n_input) array (cast to f32 inside the kernel, like .float()).
    params: output of prepare_params (lane-padded, (in,out)-layout weights).
    Returns torch.squeeze(a) semantics: all size-1 dims dropped.
    """
    B = state.shape[0]
    n_in = state.shape[-1]
    nf_p = params["w1"].shape[1]
    no_p = params["w3"].shape[1]

    # Batch tile: multiple of the f32 sublane width, capped at block_b.
    tb = min(block_b, _round_up(B, _SUBLANE))
    grid = (pl.cdiv(B, tb),)

    out = pl.pallas_call(
        _value_critic_kernel,
        out_shape=jax.ShapeDtypeStruct((B, no_p), jnp.float32),
        grid=grid,
        in_specs=[
            # state (B, 1, n_in): squeeze the middle dim in the BlockSpec so the
            # kernel sees a (tb, n_in) tile; no wrapper-side squeeze/astype.
            pl.BlockSpec((tb, pl.Squeezed(), n_in), lambda i: (i, 0, 0)),
            # Weights / biases: single full blocks, index invariant across the
            # batch grid so they stay resident in VMEM (no re-DMA per step).
            pl.BlockSpec((n_in, nf_p), lambda i: (0, 0)),
            pl.BlockSpec((1, nf_p), lambda i: (0, 0)),
            pl.BlockSpec((nf_p, nf_p), lambda i: (0, 0)),
            pl.BlockSpec((1, nf_p), lambda i: (0, 0)),
            pl.BlockSpec((nf_p, no_p), lambda i: (0, 0)),
            pl.BlockSpec((1, no_p), lambda i: (0, 0)),
        ],
        out_specs=pl.BlockSpec((tb, no_p), lambda i: (i, 0)),
        compiler_params=pltpu.CompilerParams(
            # Batch tiles are independent -> shard across TensorCores (v7x: 2 TCs).
            dimension_semantics=("parallel",),
        ),
    )(
        state,
        params["w1"], params["b1"],
        params["w2"], params["b2"],
        params["w3"], params["b3"],
    )

    # Drop the lane padding, then torch.squeeze(a): drop all size-1 dims.
    return jnp.squeeze(out[:, :n_out])


# ----------------------------------------------------------------------------
# Initialization matching the PyTorch module (xavier_uniform_ weights,
# nn.Linear default U(-1/sqrt(fan_in), 1/sqrt(fan_in)) biases).
# ----------------------------------------------------------------------------
def _xavier_uniform(key, fan_in, fan_out, gain):
    limit = gain * jnp.sqrt(6.0 / (fan_in + fan_out))
    # stored as (fan_in, fan_out) = transpose of torch layout (uniform is symmetric).
    return jax.random.uniform(key, (fan_in, fan_out), jnp.float32, -limit, limit)


def init_params(key, n_input, n_features, n_output):
    k1, k2, k3, kb1, kb2, kb3 = jax.random.split(key, 6)
    gain_relu = jnp.sqrt(2.0)   # calculate_gain('relu')
    gain_lin = 1.0              # calculate_gain('linear')
    b_lim1 = 1.0 / jnp.sqrt(n_input)
    b_lim2 = 1.0 / jnp.sqrt(n_features)
    b_lim3 = 1.0 / jnp.sqrt(n_features)
    return {
        "w1": _xavier_uniform(k1, n_input, n_features, gain_relu),
        "b1": jax.random.uniform(kb1, (n_features,), jnp.float32, -b_lim1, b_lim1),
        "w2": _xavier_uniform(k2, n_features, n_features, gain_relu),
        "b2": jax.random.uniform(kb2, (n_features,), jnp.float32, -b_lim2, b_lim2),
        "w3": _xavier_uniform(k3, n_features, n_output, gain_lin),
        "b3": jax.random.uniform(kb3, (n_output,), jnp.float32, -b_lim3, b_lim3),
    }


if __name__ == "__main__":
    key = jax.random.PRNGKey(0)
    k_state, k_params = jax.random.split(key)

    # Small shapes consistent with the module: batch=8, state dim=4,
    # n_features=32, scalar value output.
    B, n_input, n_features, n_output = 8, 4, 32, 1

    state = jax.random.normal(k_state, (B, 1, n_input), dtype=jnp.float32)
    raw_params = init_params(k_params, n_input, n_features, n_output)

    # One-time layout/cast/pad (f32 by default; pass jnp.bfloat16 to trade a
    # little precision for MXU throughput when the network is scaled up).
    params, n_out = prepare_params(raw_params, compute_dtype=jnp.float32)

    out = value_critic_forward(state, params, n_out=n_out)
    out = jax.block_until_ready(out)

    # Pure-JAX f32 reference on the unpadded params (same math, no Pallas).
    x = jnp.squeeze(state, axis=1).astype(jnp.float32)
    h1 = jnp.maximum(x @ raw_params["w1"] + raw_params["b1"], 0.0)
    h2 = jnp.maximum(h1 @ raw_params["w2"] + raw_params["b2"], 0.0)
    ref = jnp.squeeze(h2 @ raw_params["w3"] + raw_params["b3"])

    assert out.shape == ref.shape == (B,), (out.shape, ref.shape)
    assert jnp.allclose(out, ref, atol=1e-5, rtol=1e-5), float(jnp.max(jnp.abs(out - ref)))

    print("KERNEL_OK")
</pallas_src>

<mosaic_0001>
module attributes {stable_mosaic.version = 11 : i64} {
  func.func @_value_critic_kernel(%arg0: i32, %arg1: memref<8x1x4xf32, #tpu.memory_space<vmem>>, %arg2: memref<4x128xf32, #tpu.memory_space<vmem>>, %arg3: memref<1x128xf32, #tpu.memory_space<vmem>>, %arg4: memref<128x128xf32, #tpu.memory_space<vmem>>, %arg5: memref<1x128xf32, #tpu.memory_space<vmem>>, %arg6: memref<128x128xf32, #tpu.memory_space<vmem>>, %arg7: memref<1x128xf32, #tpu.memory_space<vmem>>, %arg8: memref<8x128xf32, #tpu.memory_space<vmem>>) attributes {dimension_semantics = [#tpu.dimension_semantics<parallel>], iteration_bounds = array<i64: 1>, scalar_prefetch = 0 : i64, scratch_operands = 0 : i64, tpu.core_type = #tpu.core_type<tc>, window_params = [{transform_indices = @transform_0, window_bounds = array<i64: 8, 1, 4>}, {pipeline_mode = #tpu.pipeline_mode<synchronous>, transform_indices = @transform_1, window_bounds = array<i64: 4, 128>}, {pipeline_mode = #tpu.pipeline_mode<synchronous>, transform_indices = @transform_2, window_bounds = array<i64: 1, 128>}, {pipeline_mode = #tpu.pipeline_mode<synchronous>, transform_indices = @transform_3, window_bounds = array<i64: 128, 128>}, {pipeline_mode = #tpu.pipeline_mode<synchronous>, transform_indices = @transform_4, window_bounds = array<i64: 1, 128>}, {pipeline_mode = #tpu.pipeline_mode<synchronous>, transform_indices = @transform_5, window_bounds = array<i64: 128, 128>}, {pipeline_mode = #tpu.pipeline_mode<synchronous>, transform_indices = @transform_6, window_bounds = array<i64: 1, 128>}, {transform_indices = @transform_7, window_bounds = array<i64: 8, 128>}]} {
    %c0 = arith.constant 0 : index
    %c0_0 = arith.constant 0 : index
    %c0_1 = arith.constant 0 : index
    %0 = vector.load %arg1[%c0, %c0_0, %c0_1] : memref<8x1x4xf32, #tpu.memory_space<vmem>>, vector<8x1x4xf32>
    %1 = vector.shape_cast %0 : vector<8x1x4xf32> to vector<8x4xf32>
    %c0_2 = arith.constant 0 : index
    %c0_3 = arith.constant 0 : index
    %2 = vector.load %arg2[%c0_2, %c0_3] : memref<4x128xf32, #tpu.memory_space<vmem>>, vector<4x128xf32>
    %cst = arith.constant dense<0.000000e+00> : vector<8x128xf32>
    %3 = tpu.matmul %1, %2, %cst {dimension_numbers = #tpu.dot_dimension_numbers<[1], [0], [0], [1], [0, 0, 1, 1], [], []>} : vector<8x4xf32>, vector<4x128xf32>, vector<8x128xf32> -> vector<8x128xf32>
    %c0_4 = arith.constant 0 : index
    %c0_5 = arith.constant 0 : index
    %4 = vector.load %arg3[%c0_4, %c0_5] : memref<1x128xf32, #tpu.memory_space<vmem>>, vector<1x128xf32>
    %5 = vector.broadcast %4 : vector<1x128xf32> to vector<8x128xf32>
    %6 = arith.addf %3, %5 : vector<8x128xf32>
    %cst_6 = arith.constant 0.000000e+00 : f32
    %7 = vector.broadcast %cst_6 : f32 to vector<8x128xf32>
    %8 = arith.maximumf %6, %7 : vector<8x128xf32>
    %c0_7 = arith.constant 0 : index
    %c0_8 = arith.constant 0 : index
    %9 = vector.load %arg4[%c0_7, %c0_8] : memref<128x128xf32, #tpu.memory_space<vmem>>, vector<128x128xf32>
    %cst_9 = arith.constant dense<0.000000e+00> : vector<8x128xf32>
    %10 = tpu.matmul %8, %9, %cst_9 {dimension_numbers = #tpu.dot_dimension_numbers<[1], [0], [0], [1], [0, 0, 1, 1], [], []>} : vector<8x128xf32>, vector<128x128xf32>, vector<8x128xf32> -> vector<8x128xf32>
    %c0_10 = arith.constant 0 : index
    %c0_11 = arith.constant 0 : index
    %11 = vector.load %arg5[%c0_10, %c0_11] : memref<1x128xf32, #tpu.memory_space<vmem>>, vector<1x128xf32>
    %12 = vector.broadcast %11 : vector<1x128xf32> to vector<8x128xf32>
    %13 = arith.addf %10, %12 : vector<8x128xf32>
    %cst_12 = arith.constant 0.000000e+00 : f32
    %14 = vector.broadcast %cst_12 : f32 to vector<8x128xf32>
    %15 = arith.maximumf %13, %14 : vector<8x128xf32>
    %c0_13 = arith.constant 0 : index
    %c0_14 = arith.constant 0 : index
    %16 = vector.load %arg6[%c0_13, %c0_14] : memref<128x128xf32, #tpu.memory_space<vmem>>, vector<128x128xf32>
    %cst_15 = arith.constant dense<0.000000e+00> : vector<8x128xf32>
    %17 = tpu.matmul %15, %16, %cst_15 {dimension_numbers = #tpu.dot_dimension_numbers<[1], [0], [0], [1], [0, 0, 1, 1], [], []>} : vector<8x128xf32>, vector<128x128xf32>, vector<8x128xf32> -> vector<8x128xf32>
    %c0_16 = arith.constant 0 : index
    %c0_17 = arith.constant 0 : index
    %18 = vector.load %arg7[%c0_16, %c0_17] : memref<1x128xf32, #tpu.memory_space<vmem>>, vector<1x128xf32>
    %19 = vector.broadcast %18 : vector<1x128xf32> to vector<8x128xf32>
    %20 = arith.addf %17, %19 : vector<8x128xf32>
    %c0_18 = arith.constant 0 : index
    %c0_19 = arith.constant 0 : index
    %21 = vector.load %arg8[%c0_18, %c0_19] : memref<8x128xf32, #tpu.memory_space<vmem>>, vector<8x128xf32>
    tpu.vector_store %arg8[%c0_18, %c0_19], %20 {strides = array<i32>} : memref<8x128xf32, #tpu.memory_space<vmem>>, vector<8x128xf32>,
    return
  }
  func.func @transform_0(%arg0: i32) -> (i32, i32, i32) {
    %c0_i32 = arith.constant 0 : i32
    %c0_i32_0 = arith.constant 0 : i32
    %c0_i32_1 = arith.constant 0 : i32
    return %arg0, %c0_i32, %c0_i32_0 : i32, i32, i32
  }
  func.func @transform_1(%arg0: i32) -> (i32, i32) {
    %c0_i32 = arith.constant 0 : i32
    %c0_i32_0 = arith.constant 0 : i32
    %c0_i32_1 = arith.constant 0 : i32
    return %c0_i32, %c0_i32_0 : i32, i32
  }
  func.func @transform_2(%arg0: i32) -> (i32, i32) {
    %c0_i32 = arith.constant 0 : i32
    %c0_i32_0 = arith.constant 0 : i32
    %c0_i32_1 = arith.constant 0 : i32
    return %c0_i32, %c0_i32_0 : i32, i32
  }
  func.func @transform_3(%arg0: i32) -> (i32, i32) {
    %c0_i32 = arith.constant 0 : i32
    %c0_i32_0 = arith.constant 0 : i32
    %c0_i32_1 = arith.constant 0 : i32
    return %c0_i32, %c0_i32_0 : i32, i32
  }
  func.func @transform_4(%arg0: i32) -> (i32, i32) {
    %c0_i32 = arith.constant 0 : i32
    %c0_i32_0 = arith.constant 0 : i32
    %c0_i32_1 = arith.constant 0 : i32
    return %c0_i32, %c0_i32_0 : i32, i32
  }
  func.func @transform_5(%arg0: i32) -> (i32, i32) {
    %c0_i32 = arith.constant 0 : i32
    %c0_i32_0 = arith.constant 0 : i32
    %c0_i32_1 = arith.constant 0 : i32
    return %c0_i32, %c0_i32_0 : i32, i32
  }
  func.func @transform_6(%arg0: i32) -> (i32, i32) {
    %c0_i32 = arith.constant 0 : i32
    %c0_i32_0 = arith.constant 0 : i32
    %c0_i32_1 = arith.constant 0 : i32
    return %c0_i32, %c0_i32_0 : i32, i32
  }
  func.func @transform_7(%arg0: i32) -> (i32, i32) {
    %c0_i32 = arith.constant 0 : i32
    %c0_i32_0 = arith.constant 0 : i32
    return %arg0, %c0_i32 : i32, i32
  }
}

</mosaic_0001>

<bundles_post_ra>
// kernel: value_critic_forward.1
= control target key start
LH: loop header
LB: loop body
LE: loop exit
PB: predicated region body
PF: predicated region fallthrough
CT: control target
= control target key end

     0   :  { %12 = vsyncpa [#allocation3], 0  ;;  %s697_s0 = inlined_call_operand.vmem [shape: f32[8,1,4], index: 0, kind: input, shape index: {}]   ;;  %s698_s1 = inlined_call_operand.vmem [shape: f32[4,128], index: 1, kind: input, shape index: {}]   ;;  %s699_s2 = inlined_call_operand.vmem [shape: f32[1,128], index: 2, kind: input, shape index: {}]   ;;  %s700_s3 = inlined_call_operand.hbm [shape: f32[128,128], index: 3, kind: input, shape index: {}]   ;;  %s701_s4 = inlined_call_operand.vmem [shape: f32[1,128], index: 4, kind: input, shape index: {}]   ;;  %s702_s5 = inlined_call_operand.hbm [shape: f32[128,128], index: 5, kind: input, shape index: {}]   ;;  %s703_s6 = inlined_call_operand.vmem [shape: f32[1,128], index: 6, kind: input, shape index: {}]   ;;  %s704_s7 = inlined_call_operand.vmem [shape: f32[8,128], index: 7, kind: output, shape index: {}]  }
   0x1   :  { %13 = vsyncpa [#allocation5], 0  ;;  %s566_s24 = smov [#allocation2]  }
   0x2   :  { %s25_s25 = sshll.u32 %s566_s24, 4  ;;  %s26_s25 = int_to_ptr.vmem [resolvable:$true] %s25_s25 }
   0x3   :  { %s530_s26 = scalar_lea.vmem %s26_s25, 2048  ;;  %p535_p1 = scmp.lt.s32.totalorder %s26_s25, %s26_s25 }
   0x4   :  { %p531_p0 = scmp.ne.s32.totalorder %s26_s25, %s530_s26  ;;  %p536_p2 = scmp.lt.s32.totalorder %s530_s26, %s530_s26 }
   0x6   :  { %p537_p3 = por %p536_p2, %p535_p1 }
   0x8   :  { %p538_p4 = pnand %p537_p3, %p531_p0 }
   0xa   :  { %541 = shalt.err (!%p538_p4)
}
   0xb   :  { %s567_s27 = smov 128   ;;  %s568_s28 = smov 8  }
   0xc   :  { %31 = dma.hbm_to_vmem [thread:$0]  %s700_s3, 2048, %s26_s25, [#allocation3], %s567_s27, %s567_s27, %s568_s28  }
   0xd   :  { %s569_s8 = smov [#allocation4]  }
   0xe   :  { %s39_s9 = sshll.u32 %s569_s8, 4  ;;  %s40_s9 = int_to_ptr.vmem [resolvable:$true] %s39_s9 }
   0xf   :  { %s550_s10 = scalar_lea.vmem %s40_s9, 2048  ;;  %p555_p6 = scmp.lt.s32.totalorder %s40_s9, %s40_s9 }
  0x10   :  { %p551_p5 = scmp.ne.s32.totalorder %s40_s9, %s550_s10  ;;  %p556_p7 = scmp.lt.s32.totalorder %s550_s10, %s550_s10 }
  0x12   :  { %p557_p8 = por %p556_p7, %p555_p6 }
  0x14   :  { %p558_p9 = pnand %p557_p8, %p551_p5 }
  0x16   :  { %561 = shalt.err (!%p558_p9)
}
  0x17   :  { %45 = dma.hbm_to_vmem [thread:$0]  %s702_s5, 2048, %s40_s9, [#allocation5], %s567_s27, %s567_s27, %s568_s28  }
  0x18   :  { %562 = dma.done.wait [#allocation3], 2048  }
  0x19   :  { %563 = vsyncadd [#allocation3], 4294965248 }
  0x1a   :  { %564 = dma.done.wait [#allocation5], 2048  }
  0x1b   :  { %565 = vsyncadd [#allocation5], 4294965248  ;;  %v85_v0 = vlaneseq  ;;  %v570_v1 = vmov 0.0   ;;  %vm571_vm0 = vmmov 0   ;;  %v572_v2 = vmov 1966171168  }
  0x1c   :  { %440 = vmatprep.subr.mxu0 %v570_v1  ;;  %442 = vmatprep.mubr.msk.f32.mxu0 %vm571_vm0, %v570_v1  ;;  %v83_v3 = vunpack.c.l.s4 %v572_v2  ;;  %vm130_vm1 = vcmask 1043456   ;;  %v62_v7 = vld [vmem:[%s698_s1] sm:$0xf]  ;;  %v58_v12 = vld [vmem:[%s697_s0 + $0x4] sm:$0x1]  ;;  %v220_v21 = vld [vmem:[#allocation2 + $0x78] sm:$0xff] }
  0x1d   :  { %v86_v4 = vshrl.u32 %v85_v0, 7  ;;  %445 = vmatprep.subr.mxu1 %v570_v1  ;;  %477 = vmatprep.mubr.msk.f32.mxu1 %vm571_vm0, %v570_v1  ;;  %v54_v8 = vld [vmem:[%s697_s0] sm:$0x1]  ;;  %v55_v9 = vld [vmem:[%s697_s0 + $0x1] sm:$0x1]  ;;  %v219_v22 = vld [vmem:[#allocation2 + $0x70] sm:$0xff] }
  0x1e   :  { %v84_v5 = vunpack.c.0.s8 %v83_v3  ;;  %441 = vmatpush3.msk.msra.mxu0 %vm130_vm1, %v62_v7  ;;  %v56_v10 = vld [vmem:[%s697_s0 + $0x2] sm:$0x1]  ;;  %v57_v11 = vld [vmem:[%s697_s0 + $0x3] sm:$0x1]  ;;  %v78_v13 = vcombine.low %v54_v8, %v55_v9  ;;  %v59_v14 = vld [vmem:[%s697_s0 + $0x5] sm:$0x1]  ;;  %446 = vmatpush3.msra.mxu1 %v220_v21 }
  0x1f   :  { %v60_v15 = vld [vmem:[%s697_s0 + $0x6] sm:$0x1]  ;;  %v61_v16 = vld [vmem:[%s697_s0 + $0x7] sm:$0x1]  ;;  %v79_v17 = vcombine.low %v56_v10, %v57_v11  ;;  %480 = vmatprep.subr.mxu0 %v570_v1  ;;  %v80_v18 = vcombine.low %v58_v12, %v59_v14  ;;  %447 = vmatprep.subr.mxu1 %v570_v1  ;;  %v218_v26 = vld [vmem:[#allocation2 + $0x68] sm:$0xff]  ;;  %vm127_vm2 = vcmask 31744  }
  0x20   :  { %v87_v6 = vsub.s32 %v84_v5, %v86_v4  ;;  %v81_v19 = vcombine.low %v60_v15, %v61_v16  ;;  %448 = vmatpush3.msra.mxu1 %v219_v22  ;;  %v217_v29 = vld [vmem:[#allocation2 + $0x60] sm:$0xff]  ;;  %v216_v32 = vld [vmem:[#allocation2 + $0x58] sm:$0xff]  ;;  %v215_v34 = vld [vmem:[#allocation2 + $0x50] sm:$0xff] }
  0x21   :  { %449 = vmatprep.subr.mxu1 %v570_v1  ;;  %v214_v35 = vld [vmem:[#allocation2 + $0x48] sm:$0xff]  ;;  %v213_v36 = vld [vmem:[#allocation2 + $0x40] sm:$0xff]  ;;  %v212_v37 = vld [vmem:[#allocation2 + $0x38] sm:$0xff] }
  0x22   :  { %v88_v20 = vrot.slane %v78_v13, %v87_v6  ;;  %v95_v23 = vrot.slane %v79_v17, %v87_v6  ;;  %v102_v24 = vrot.slane %v80_v18, %v87_v6  ;;  %v109_v25 = vrot.slane %v81_v19, %v87_v6  ;;  %450 = vmatpush3.msra.mxu1 %v218_v26  ;;  %v211_v38 = vld [vmem:[#allocation2 + $0x30] sm:$0xff]  ;;  %v210_v39 = vld [vmem:[#allocation2 + $0x28] sm:$0xff]  ;;  %v209_v40 = vld [vmem:[#allocation2 + $0x20] sm:$0xff] }
  0x23   :  { %451 = vmatprep.subr.mxu1 %v570_v1  ;;  %v208_v41 = vld [vmem:[#allocation2 + $0x18] sm:$0xff]  ;;  %v207_v42 = vld [vmem:[#allocation2 + $0x10] sm:$0xff]  ;;  %v206_v43 = vld [vmem:[#allocation2 + $0x8] sm:$0xff] }
  0x24   :  { %v110_v27 = vcombine.low %v88_v20, %v95_v23  ;;  %v111_v28 = vcombine.low %v102_v24, %v109_v25  ;;  %452 = vmatpush3.msra.mxu1 %v217_v29  ;;  %v205_v44 = vld [vmem:[#allocation2] sm:$0xff]  ;;  %v314_v45 = vld [vmem:[#allocation4 + $0x78] sm:$0xff]  ;;  %v313_v46 = vld [vmem:[#allocation4 + $0x70] sm:$0xff] }
  0x25   :  { %453 = vmatprep.subr.mxu1 %v570_v1  ;;  %v312_v47 = vld [vmem:[#allocation4 + $0x68] sm:$0xff]  ;;  %v311_v48 = vld [vmem:[#allocation4 + $0x60] sm:$0xff]  ;;  %v310_v49 = vld [vmem:[#allocation4 + $0x58] sm:$0xff] }
  0x26   :  { %v118_v30 = vrot.slane %v110_v27, %v87_v6  ;;  %v125_v31 = vrot.slane %v111_v28, %v87_v6  ;;  %454 = vmatpush3.msra.mxu1 %v216_v32  ;;  %v309_v50 = vld [vmem:[#allocation4 + $0x50] sm:$0xff]  ;;  %v308_v51 = vld [vmem:[#allocation4 + $0x48] sm:$0xff]  ;;  %v307_v52 = vld [vmem:[#allocation4 + $0x40] sm:$0xff] }
  0x27   :  { %455 = vmatprep.subr.mxu1 %v570_v1  ;;  %v306_v53 = vld [vmem:[#allocation4 + $0x38] sm:$0xff]  ;;  %v305_v54 = vld [vmem:[#allocation4 + $0x30] sm:$0xff]  ;;  %v304_v55 = vld [vmem:[#allocation4 + $0x28] sm:$0xff] }
  0x28   :  { %v126_v33 = vcombine.low %v118_v30, %v125_v31  ;;  %456 = vmatpush3.msra.mxu1 %v215_v34  ;;  %v303_v56 = vld [vmem:[#allocation4 + $0x20] sm:$0xff]  ;;  %v302_v57 = vld [vmem:[#allocation4 + $0x18] sm:$0xff]  ;;  %v301_v63 = vld [vmem:[#allocation4 + $0x10] sm:$0xff] }
  0x29   :  { %457 = vmatprep.subr.mxu1 %v570_v1  ;;  %v399_v58 = vld [vmem:[%s699_s2] ss:$0 sm:$0xff]  ;;  %v300_v0 = vld [vmem:[#allocation4 + $0x8] sm:$0xff] }
  0x2a   :  { %443 = vmatmul.mubr.msk.f32.vlgmr.msra.gmra.mxu0 %vm127_vm2, %v126_v33  ;;  %458 = vmatpush3.msra.mxu1 %v214_v35  ;;  %v299_v2 = vld [vmem:[#allocation4] sm:$0xff] }
  0x2b   :  { %512 = vmatprep.mubr.msk.f32.mxu0 %vm571_vm0, %v570_v1  ;;  %459 = vmatprep.subr.mxu1 %v570_v1  ;;  %v402_v3 = vld [vmem:[%s701_s4] ss:$0 sm:$0xff] }
  0x2c   :  { %460 = vmatpush3.msra.mxu1 %v213_v36  ;;  %481 = vmatpush3.msra.mxu0 %v314_v45  ;;  %v403_v8 = vld [vmem:[%s703_s6] ss:$0 sm:$0xff] }
  0x2d   :  { %461 = vmatprep.subr.mxu1 %v570_v1  ;;  %482 = vmatprep.subr.mxu0 %v570_v1 }
  0x2e   :  { %462 = vmatpush3.msra.mxu1 %v212_v37  ;;  %483 = vmatpush3.msra.mxu0 %v313_v46 }
  0x2f   :  { %463 = vmatprep.subr.mxu1 %v570_v1  ;;  %484 = vmatprep.subr.mxu0 %v570_v1 }
  0x30   :  { %464 = vmatpush3.msra.mxu1 %v211_v38  ;;  %485 = vmatpush3.msra.mxu0 %v312_v47 }
  0x31   :  { %465 = vmatprep.subr.mxu1 %v570_v1  ;;  %486 = vmatprep.subr.mxu0 %v570_v1 }
  0x32   :  { %466 = vmatpush3.msra.mxu1 %v210_v39  ;;  %487 = vmatpush3.msra.mxu0 %v311_v48 }
  0x33   :  { %467 = vmatprep.subr.mxu1 %v570_v1  ;;  %488 = vmatprep.subr.mxu0 %v570_v1 }
  0x34   :  { %468 = vmatpush3.msra.mxu1 %v209_v40  ;;  %489 = vmatpush3.msra.mxu0 %v310_v49 }
  0x35   :  { %469 = vmatprep.subr.mxu1 %v570_v1  ;;  %490 = vmatprep.subr.mxu0 %v570_v1 }
  0x36   :  { %470 = vmatpush3.msra.mxu1 %v208_v41  ;;  %491 = vmatpush3.msra.mxu0 %v309_v50 }
  0x37   :  { %471 = vmatprep.subr.mxu1 %v570_v1  ;;  %492 = vmatprep.subr.mxu0 %v570_v1 }
  0x38   :  { %472 = vmatpush3.msra.mxu1 %v207_v42  ;;  %493 = vmatpush3.msra.mxu0 %v308_v51 }
  0x39   :  { %473 = vmatprep.subr.mxu1 %v570_v1  ;;  %494 = vmatprep.subr.mxu0 %v570_v1 }
  0x3a   :  { %474 = vmatpush3.msra.mxu1 %v206_v43  ;;  %495 = vmatpush3.msra.mxu0 %v307_v52 }
  0x3b   :  { %475 = vmatprep.subr.mxu1 %v570_v1  ;;  %496 = vmatprep.subr.mxu0 %v570_v1 }
  0x3c   :  { %476 = vmatpush3.msra.mxu1 %v205_v44  ;;  %497 = vmatpush3.msra.mxu0 %v306_v53 }
  0x3d   :  { %498 = vmatprep.subr.mxu0 %v570_v1 }
  0x3e   :  { %499 = vmatpush3.msra.mxu0 %v305_v54 }
  0x3f   :  { %500 = vmatprep.subr.mxu0 %v570_v1 }
  0x40   :  { %501 = vmatpush3.msra.mxu0 %v304_v55 }
  0x41   :  { %502 = vmatprep.subr.mxu0 %v570_v1 }
  0x42   :  { %503 = vmatpush3.msra.mxu0 %v303_v56 }
  0x43   :  { %504 = vmatprep.subr.mxu0 %v570_v1 }
  0x44   :  { %505 = vmatpush3.msra.mxu0 %v302_v57 }
  0x45   :  { %506 = vmatprep.subr.mxu0 %v570_v1 }
  0x46   :  { %507 = vmatpush3.msra.mxu0 %v301_v63 }
  0x47   :  { %508 = vmatprep.subr.mxu0 %v570_v1 }
  0x48   :  { %509 = vmatpush3.msra.mxu0 %v300_v0 }
  0x49   :  { %510 = vmatprep.subr.mxu0 %v570_v1 }
  0x4a   :  { %511 = vmatpush3.msra.mxu0 %v299_v2 }
  0xea   :  { %v200_v59 = vpop.f32.mrf.mxu0 }
  0xeb   :  { %v201_v60 = vadd.f32 %v399_v58, %v200_v59 }
  0xec   :  { %v444_v61 = vpop.f32.mrf.mxu0 }
  0xed   :  { %v204_v62 = vmax.f32 %v201_v60, 0.0 }
  0xef   :  { %478 = vmatmul.mubr.f32.vlgmr.msra.gmra.mxu1 %v204_v62 }
 0x1af   :  { %v294_v4 = vpop.f32.mrf.mxu1 }
 0x1b0   :  { %v295_v5 = vadd.f32 %v402_v3, %v294_v4 }
 0x1b1   :  { %v479_v6 = vpop.f32.mrf.mxu1 }
 0x1b2   :  { %v298_v7 = vmax.f32 %v295_v5, 0.0 }
 0x1b4   :  { %513 = vmatmul.mubr.f32.vlgmr.msra.gmra.mxu0 %v298_v7 }
 0x274   :  { %v388_v9 = vpop.f32.mrf.mxu0 }
 0x275   :  { %v389_v10 = vadd.f32 %v403_v8, %v388_v9 }
 0x276   :  { %v514_v11 = vpop.f32.mrf.mxu0 }
 0x277   :  { %392 = vst [vmem:[%s704_s7] sm:$0xff] %v389_v10 }
 0x278   :  { %397 = vsyncpa [#allocation3], 1 }
 0x279   :  { %398 = vsyncpa [#allocation5], 1 }

</bundles_post_ra>
